<compile_context>
chip_gen: v6e
topology: v6e:2x2x1
jax: 0.10.0
libtpu: 0.0.40
codegen_flags: <defaults>
</compile_context>

<pallas_src>
import numpy as np
import jax
import jax.numpy as jnp
from jax.experimental import pallas as pl
from jax.experimental.pallas import tpu as pltpu


# ----------------------------------------------------------------------------
# Pallas kernel: per-mode complex channel mixing
# ----------------------------------------------------------------------------
def _fourier_mix_kernel(x_ref, w_ref, o_ref):
    """out[b,o,r,l] = sum_i x[b,i,r,l] * w[i,o,r,l]   (complex, r/i stacked on axis 0).

    Block shapes:
      x_ref: (2B,   Cin,  SUB, 128)   rows [0:B]   = Re(x), [B:2B]    = Im(x)
      w_ref: (2Cin, Cout, SUB, 128)   rows [0:Cin] = Re(w), [Cin:2Cin]= Im(w)
      o_ref: (2B,   Cout, SUB, 128)
    """
    nb = x_ref.shape[0] // 2
    cin = w_ref.shape[0] // 2
    cout = w_ref.shape[1]
    acc_shape = (nb, cout) + x_ref.shape[2:]          # (B, Cout, SUB, 128)

    def body(i, acc):
        acc_r, acc_i = acc
        # Index the Refs directly (only the live (.,1,SUB,128) slabs stay resident).
        xr = x_ref[pl.ds(0, nb), pl.ds(i, 1)]         # (B, 1, SUB, 128)
        xi = x_ref[pl.ds(nb, nb), pl.ds(i, 1)]        # (B, 1, SUB, 128)
        wr = w_ref[pl.ds(i, 1)]                       # (1, Cout, SUB, 128)
        wi = w_ref[pl.ds(cin + i, 1)]                 # (1, Cout, SUB, 128)
        # complex multiply-accumulate (pure per-lane VPU work)
        return (acc_r + xr * wr - xi * wi,
                acc_i + xr * wi + xi * wr)

    init = (jnp.zeros(acc_shape, jnp.float32), jnp.zeros(acc_shape, jnp.float32))
    if cin <= 8:
        # tiny channel counts: static unroll
        acc_r, acc_i = init
        for i in range(cin):
            acc_r, acc_i = body(i, (acc_r, acc_i))
    else:
        # realistic channel counts: bounded unroll keeps code size / vreg pressure bounded
        acc_r, acc_i = jax.lax.fori_loop(0, cin, body, init, unroll=4)

    o_ref[pl.ds(0, nb)] = acc_r
    o_ref[pl.ds(nb, nb)] = acc_i


def _choose_row_tile(m_rows, b, cin, cout, vmem_budget_bytes=24 * 1024 * 1024):
    """Sublane-rows (of 128 lanes) of the flattened mode axis per grid step.

    Per-step VMEM footprint: double-buffered (x2), real+imag stacked (x2), f32 (4 B),
    128 lanes, summed over the x / w / out streams.
    """
    bytes_per_row = 2 * 2 * 4 * 128 * (b * cin + cin * cout + b * cout)
    cap = max(8, (vmem_budget_bytes // bytes_per_row) // 8 * 8)
    if m_rows <= 8:
        # single block == full mode-row dim (allowed by the (8,128) tiling rule)
        return m_rows
    # Multiple of 8 (dense sublane packing), capped by the VMEM budget and by 64
    # rows (8K modes / step), and small enough to keep >= 2 grid steps so the
    # "parallel" mode axis can be sharded across v7x's two TensorCores.
    half = max(8, (-(-m_rows // 2)) // 8 * 8)
    return min(64, cap, half)


def _pallas_complex_mix(xs, ws):
    """xs: (2B, Cin, Mr, 128) f32; ws: (2Cin, Cout, Mr, 128) f32 -> (2B, Cout, Mr, 128) f32."""
    two_b, cin, m_rows, lanes = xs.shape
    b = two_b // 2
    cout = ws.shape[1]
    assert lanes == 128 and ws.shape[0] == 2 * cin and ws.shape[2] == m_rows

    sub = _choose_row_tile(m_rows, b, cin, cout)
    grid = (pl.cdiv(m_rows, sub),)          # ragged final block is masked by Pallas

    x_spec = pl.BlockSpec((two_b, cin, sub, 128), lambda m: (0, 0, m, 0))
    w_spec = pl.BlockSpec((2 * cin, cout, sub, 128), lambda m: (0, 0, m, 0))
    o_spec = pl.BlockSpec((two_b, cout, sub, 128), lambda m: (0, 0, m, 0))

    m_total = m_rows * 128
    cost = pl.CostEstimate(
        flops=8 * b * cin * cout * m_total,
        transcendentals=0,
        bytes_accessed=2 * 4 * m_total * (b * cin + cin * cout + b * cout),
    )

    return pl.pallas_call(
        _fourier_mix_kernel,
        out_shape=jax.ShapeDtypeStruct((two_b, cout, m_rows, 128), jnp.float32),
        grid_spec=pltpu.PrefetchScalarGridSpec(
            num_scalar_prefetch=0,
            grid=grid,
            in_specs=[x_spec, w_spec],
            out_specs=o_spec,
        ),
        compiler_params=pltpu.CompilerParams(
            dimension_semantics=("parallel",),
            vmem_limit_bytes=48 * 1024 * 1024,   # raise v5e/v6e/v7x scoped default, stay < v7x 64 MiB
        ),
        cost_estimate=cost,
    )(xs, ws)


# ----------------------------------------------------------------------------
# Parameter packing (done ONCE at init, not per forward call)
# ----------------------------------------------------------------------------
def pack_fourier_weights(w_real, w_imag):
    """(Cin, Cout, 2ms, 2ms, mt) real+imag -> (2Cin, Cout, Mr, 128) f32.

    Flattens the retained modes to M, zero-pads M to a multiple of 128 and stacks
    real/imag along the Cin axis.  This is the stored parameter form, so the
    dominant HBM stream is never re-padded/re-copied in the forward pass.
    """
    cin, cout = w_real.shape[:2]
    M = int(np.prod(w_real.shape[2:]))
    m_rows = -(-M // 128)
    w = jnp.concatenate([w_real.reshape(cin, cout, M),
                         w_imag.reshape(cin, cout, M)], axis=0).astype(jnp.float32)
    if m_rows * 128 != M:
        w = jnp.pad(w, ((0, 0), (0, 0), (0, m_rows * 128 - M)))
    return w.reshape(2 * cin, cout, m_rows, 128)


# ----------------------------------------------------------------------------
# Forward pass (equivalent of FourierLayer.forward)
# ----------------------------------------------------------------------------
def fourier_layer_forward(x, w_packed, modes_space, modes_time):
    """x: (B, Cin, X, Y, T) f32;  w_packed: output of pack_fourier_weights.

    Returns (B, Cout, X, Y, T) f32.
    """
    B, Cin, X, Y, T = x.shape
    assert X % 2 == 0 and Y % 2 == 0, "module's fftshift-before-irfftn only matches ifftshift for even dims"
    cout = w_packed.shape[1]
    assert w_packed.shape[0] == 2 * Cin
    ms2 = 2 * modes_space
    M = ms2 * ms2 * modes_time
    m_rows = w_packed.shape[2]
    assert m_rows * 128 >= M

    # --- FFT glue (no Pallas TPU FFT) ---
    x_ft = jnp.fft.rfftn(x, axes=(-3, -2, -1))
    x_ft = jnp.fft.fftshift(x_ft, axes=(-3, -2))
    Tf = x_ft.shape[-1]
    midX, midY = X // 2, Y // 2
    slab = x_ft[..., midX - modes_space: midX + modes_space,
                     midY - modes_space: midY + modes_space,
                     :modes_time]                               # (B, Cin, 2ms, 2ms, mt) c64

    # pack activations: stack Re/Im along batch, flatten modes, pad to Mr*128
    xs = jnp.concatenate([jnp.real(slab), jnp.imag(slab)], axis=0)    # (2B, Cin, 2ms, 2ms, mt)
    xs = xs.reshape(2 * B, Cin, M).astype(jnp.float32)
    if m_rows * 128 != M:
        xs = jnp.pad(xs, ((0, 0), (0, 0), (0, m_rows * 128 - M)))
    xs = xs.reshape(2 * B, Cin, m_rows, 128)

    # --- hot path: per-mode complex channel mixing in Pallas ---
    out_packed = _pallas_complex_mix(xs, w_packed)              # (2B, Cout, Mr, 128)

    out_flat = out_packed.reshape(2 * B, cout, m_rows * 128)[..., :M]
    out_slab = (out_flat[:B] + 1j * out_flat[B:]).astype(jnp.complex64)
    out_slab = out_slab.reshape(B, cout, ms2, ms2, modes_time)

    out_ft = jnp.zeros((B, cout, X, Y, Tf), dtype=jnp.complex64)
    out_ft = out_ft.at[..., midX - modes_space: midX + modes_space,
                            midY - modes_space: midY + modes_space,
                            :modes_time].set(out_slab)
    out_ft = jnp.fft.fftshift(out_ft, axes=(-3, -2))
    out = jnp.fft.irfftn(out_ft, s=(X, Y, T), axes=(-3, -2, -1))
    return out.astype(jnp.float32)


# ----------------------------------------------------------------------------
# Pure-JAX reference mirroring the PyTorch module exactly
# ----------------------------------------------------------------------------
def _reference_forward(x, w_real, w_imag, modes_space, modes_time):
    B, Cin, X, Y, T = x.shape
    Cout = w_real.shape[1]
    w = (w_real + 1j * w_imag).astype(jnp.complex64)
    x_ft = jnp.fft.rfftn(x, axes=(-3, -2, -1))
    x_ft = jnp.fft.fftshift(x_ft, axes=(-3, -2))
    Tf = x_ft.shape[-1]
    midX, midY = X // 2, Y // 2
    slab = x_ft[..., midX - modes_space: midX + modes_space,
                     midY - modes_space: midY + modes_space, :modes_time]
    out_slab = jnp.einsum('bixyt,ioxyt->boxyt', slab, w)
    out_ft = jnp.zeros((B, Cout, X, Y, Tf), dtype=jnp.complex64)
    out_ft = out_ft.at[..., midX - modes_space: midX + modes_space,
                            midY - modes_space: midY + modes_space,
                            :modes_time].set(out_slab)
    out_ft = jnp.fft.fftshift(out_ft, axes=(-3, -2))
    return jnp.fft.irfftn(out_ft, s=(X, Y, T), axes=(-3, -2, -1)).astype(jnp.float32)


if __name__ == "__main__":
    forward = jax.jit(fourier_layer_forward, static_argnums=(2, 3))

    def run_case(key, B, Cin, Cout, modes_space, modes_time, X, Y, T, rtol, atol):
        kx, kwr, kwi = jax.random.split(key, 3)
        x = jax.random.normal(kx, (B, Cin, X, Y, T), dtype=jnp.float32)
        # mirrors: scale * torch.rand(in, out, 2*ms, 2*ms, mt, dtype=cfloat)
        scale = 1.0 / (Cin * Cout)
        w_shape = (Cin, Cout, 2 * modes_space, 2 * modes_space, modes_time)
        w_real = scale * jax.random.uniform(kwr, w_shape, dtype=jnp.float32)
        w_imag = scale * jax.random.uniform(kwi, w_shape, dtype=jnp.float32)

        w_packed = pack_fourier_weights(w_real, w_imag)    # "init"-time packing
        out = forward(x, w_packed, modes_space, modes_time)
        out = jax.block_until_ready(out)

        out_ref = _reference_forward(x, w_real, w_imag, modes_space, modes_time)
        np.testing.assert_allclose(np.asarray(out), np.asarray(out_ref),
                                   rtol=rtol, atol=atol)
        assert out.shape == (B, Cout, X, Y, T)

    key = jax.random.PRNGKey(0)
    k1, k2 = jax.random.split(key)

    # Case 1: module-consistent toy shapes (same as the original spec example).
    run_case(k1, B=2, Cin=4, Cout=4, modes_space=4, modes_time=4,
             X=16, Y=16, T=16, rtol=1e-4, atol=1e-5)

    # Case 2: larger channel count + ragged mode axis -> exercises the
    # fori_loop path, the multi-block (megacore-shardable) grid and the
    # masked final block.
    run_case(k2, B=2, Cin=16, Cout=8, modes_space=6, modes_time=10,
             X=16, Y=16, T=20, rtol=2e-4, atol=2e-5)

    print("KERNEL_OK")
</pallas_src>

<mosaic_0001>
module attributes {stable_mosaic.version = 11 : i64} {
  func.func @_fourier_mix_kernel(%arg0: i32, %arg1: memref<4x4x2x128xf32, #tpu.memory_space<vmem>>, %arg2: memref<8x4x2x128xf32, #tpu.memory_space<vmem>>, %arg3: memref<4x4x2x128xf32, #tpu.memory_space<vmem>>) attributes {dimension_semantics = [#tpu.dimension_semantics<parallel>], iteration_bounds = array<i64: 1>, scalar_prefetch = 0 : i64, scratch_operands = 0 : i64, tpu.core_type = #tpu.core_type<tc>, window_params = [{transform_indices = @transform_0, window_bounds = array<i64: 4, 4, 2, 128>}, {transform_indices = @transform_1, window_bounds = array<i64: 8, 4, 2, 128>}, {transform_indices = @transform_2, window_bounds = array<i64: 4, 4, 2, 128>}]} {
    %cst = arith.constant 0.000000e+00 : f32
    %0 = vector.broadcast %cst : f32 to vector<2x4x2x128xf32>
    %cst_0 = arith.constant 0.000000e+00 : f32
    %1 = vector.broadcast %cst_0 : f32 to vector<2x4x2x128xf32>
    %c0 = arith.constant 0 : index
    %c0_1 = arith.constant 0 : index
    %c0_2 = arith.constant 0 : index
    %c0_3 = arith.constant 0 : index
    %2 = vector.load %arg1[%c0, %c0_1, %c0_2, %c0_3] : memref<4x4x2x128xf32, #tpu.memory_space<vmem>>, vector<2x1x2x128xf32>
    %c2 = arith.constant 2 : index
    %c0_4 = arith.constant 0 : index
    %c0_5 = arith.constant 0 : index
    %c0_6 = arith.constant 0 : index
    %3 = vector.load %arg1[%c2, %c0_4, %c0_5, %c0_6] : memref<4x4x2x128xf32, #tpu.memory_space<vmem>>, vector<2x1x2x128xf32>
    %c0_7 = arith.constant 0 : index
    %c0_8 = arith.constant 0 : index
    %c0_9 = arith.constant 0 : index
    %c0_10 = arith.constant 0 : index
    %4 = vector.load %arg2[%c0_7, %c0_8, %c0_9, %c0_10] : memref<8x4x2x128xf32, #tpu.memory_space<vmem>>, vector<1x4x2x128xf32>
    %c4 = arith.constant 4 : index
    %c0_11 = arith.constant 0 : index
    %c0_12 = arith.constant 0 : index
    %c0_13 = arith.constant 0 : index
    %5 = vector.load %arg2[%c4, %c0_11, %c0_12, %c0_13] : memref<8x4x2x128xf32, #tpu.memory_space<vmem>>, vector<1x4x2x128xf32>
    %6 = vector.broadcast %2 : vector<2x1x2x128xf32> to vector<2x4x2x128xf32>
    %7 = vector.broadcast %4 : vector<1x4x2x128xf32> to vector<2x4x2x128xf32>
    %8 = arith.mulf %6, %7 : vector<2x4x2x128xf32>
    %9 = arith.addf %0, %8 : vector<2x4x2x128xf32>
    %10 = vector.broadcast %3 : vector<2x1x2x128xf32> to vector<2x4x2x128xf32>
    %11 = vector.broadcast %5 : vector<1x4x2x128xf32> to vector<2x4x2x128xf32>
    %12 = arith.mulf %10, %11 : vector<2x4x2x128xf32>
    %13 = arith.subf %9, %12 : vector<2x4x2x128xf32>
    %14 = vector.broadcast %2 : vector<2x1x2x128xf32> to vector<2x4x2x128xf32>
    %15 = vector.broadcast %5 : vector<1x4x2x128xf32> to vector<2x4x2x128xf32>
    %16 = arith.mulf %14, %15 : vector<2x4x2x128xf32>
    %17 = arith.addf %1, %16 : vector<2x4x2x128xf32>
    %18 = vector.broadcast %3 : vector<2x1x2x128xf32> to vector<2x4x2x128xf32>
    %19 = vector.broadcast %4 : vector<1x4x2x128xf32> to vector<2x4x2x128xf32>
    %20 = arith.mulf %18, %19 : vector<2x4x2x128xf32>
    %21 = arith.addf %17, %20 : vector<2x4x2x128xf32>
    %c0_14 = arith.constant 0 : index
    %c1 = arith.constant 1 : index
    %c0_15 = arith.constant 0 : index
    %c0_16 = arith.constant 0 : index
    %22 = vector.load %arg1[%c0_14, %c1, %c0_15, %c0_16] : memref<4x4x2x128xf32, #tpu.memory_space<vmem>>, vector<2x1x2x128xf32>
    %c2_17 = arith.constant 2 : index
    %c1_18 = arith.constant 1 : index
    %c0_19 = arith.constant 0 : index
    %c0_20 = arith.constant 0 : index
    %23 = vector.load %arg1[%c2_17, %c1_18, %c0_19, %c0_20] : memref<4x4x2x128xf32, #tpu.memory_space<vmem>>, vector<2x1x2x128xf32>
    %c1_21 = arith.constant 1 : index
    %c0_22 = arith.constant 0 : index
    %c0_23 = arith.constant 0 : index
    %c0_24 = arith.constant 0 : index
    %24 = vector.load %arg2[%c1_21, %c0_22, %c0_23, %c0_24] : memref<8x4x2x128xf32, #tpu.memory_space<vmem>>, vector<1x4x2x128xf32>
    %c5 = arith.constant 5 : index
    %c0_25 = arith.constant 0 : index
    %c0_26 = arith.constant 0 : index
    %c0_27 = arith.constant 0 : index
    %25 = vector.load %arg2[%c5, %c0_25, %c0_26, %c0_27] : memref<8x4x2x128xf32, #tpu.memory_space<vmem>>, vector<1x4x2x128xf32>
    %26 = vector.broadcast %22 : vector<2x1x2x128xf32> to vector<2x4x2x128xf32>
    %27 = vector.broadcast %24 : vector<1x4x2x128xf32> to vector<2x4x2x128xf32>
    %28 = arith.mulf %26, %27 : vector<2x4x2x128xf32>
    %29 = arith.addf %13, %28 : vector<2x4x2x128xf32>
    %30 = vector.broadcast %23 : vector<2x1x2x128xf32> to vector<2x4x2x128xf32>
    %31 = vector.broadcast %25 : vector<1x4x2x128xf32> to vector<2x4x2x128xf32>
    %32 = arith.mulf %30, %31 : vector<2x4x2x128xf32>
    %33 = arith.subf %29, %32 : vector<2x4x2x128xf32>
    %34 = vector.broadcast %22 : vector<2x1x2x128xf32> to vector<2x4x2x128xf32>
    %35 = vector.broadcast %25 : vector<1x4x2x128xf32> to vector<2x4x2x128xf32>
    %36 = arith.mulf %34, %35 : vector<2x4x2x128xf32>
    %37 = arith.addf %21, %36 : vector<2x4x2x128xf32>
    %38 = vector.broadcast %23 : vector<2x1x2x128xf32> to vector<2x4x2x128xf32>
    %39 = vector.broadcast %24 : vector<1x4x2x128xf32> to vector<2x4x2x128xf32>
    %40 = arith.mulf %38, %39 : vector<2x4x2x128xf32>
    %41 = arith.addf %37, %40 : vector<2x4x2x128xf32>
    %c0_28 = arith.constant 0 : index
    %c2_29 = arith.constant 2 : index
    %c0_30 = arith.constant 0 : index
    %c0_31 = arith.constant 0 : index
    %42 = vector.load %arg1[%c0_28, %c2_29, %c0_30, %c0_31] : memref<4x4x2x128xf32, #tpu.memory_space<vmem>>, vector<2x1x2x128xf32>
    %c2_32 = arith.constant 2 : index
    %c2_33 = arith.constant 2 : index
    %c0_34 = arith.constant 0 : index
    %c0_35 = arith.constant 0 : index
    %43 = vector.load %arg1[%c2_32, %c2_33, %c0_34, %c0_35] : memref<4x4x2x128xf32, #tpu.memory_space<vmem>>, vector<2x1x2x128xf32>
    %c2_36 = arith.constant 2 : index
    %c0_37 = arith.constant 0 : index
    %c0_38 = arith.constant 0 : index
    %c0_39 = arith.constant 0 : index
    %44 = vector.load %arg2[%c2_36, %c0_37, %c0_38, %c0_39] : memref<8x4x2x128xf32, #tpu.memory_space<vmem>>, vector<1x4x2x128xf32>
    %c6 = arith.constant 6 : index
    %c0_40 = arith.constant 0 : index
    %c0_41 = arith.constant 0 : index
    %c0_42 = arith.constant 0 : index
    %45 = vector.load %arg2[%c6, %c0_40, %c0_41, %c0_42] : memref<8x4x2x128xf32, #tpu.memory_space<vmem>>, vector<1x4x2x128xf32>
    %46 = vector.broadcast %42 : vector<2x1x2x128xf32> to vector<2x4x2x128xf32>
    %47 = vector.broadcast %44 : vector<1x4x2x128xf32> to vector<2x4x2x128xf32>
    %48 = arith.mulf %46, %47 : vector<2x4x2x128xf32>
    %49 = arith.addf %33, %48 : vector<2x4x2x128xf32>
    %50 = vector.broadcast %43 : vector<2x1x2x128xf32> to vector<2x4x2x128xf32>
    %51 = vector.broadcast %45 : vector<1x4x2x128xf32> to vector<2x4x2x128xf32>
    %52 = arith.mulf %50, %51 : vector<2x4x2x128xf32>
    %53 = arith.subf %49, %52 : vector<2x4x2x128xf32>
    %54 = vector.broadcast %42 : vector<2x1x2x128xf32> to vector<2x4x2x128xf32>
    %55 = vector.broadcast %45 : vector<1x4x2x128xf32> to vector<2x4x2x128xf32>
    %56 = arith.mulf %54, %55 : vector<2x4x2x128xf32>
    %57 = arith.addf %41, %56 : vector<2x4x2x128xf32>
    %58 = vector.broadcast %43 : vector<2x1x2x128xf32> to vector<2x4x2x128xf32>
    %59 = vector.broadcast %44 : vector<1x4x2x128xf32> to vector<2x4x2x128xf32>
    %60 = arith.mulf %58, %59 : vector<2x4x2x128xf32>
    %61 = arith.addf %57, %60 : vector<2x4x2x128xf32>
    %c0_43 = arith.constant 0 : index
    %c3 = arith.constant 3 : index
    %c0_44 = arith.constant 0 : index
    %c0_45 = arith.constant 0 : index
    %62 = vector.load %arg1[%c0_43, %c3, %c0_44, %c0_45] : memref<4x4x2x128xf32, #tpu.memory_space<vmem>>, vector<2x1x2x128xf32>
    %c2_46 = arith.constant 2 : index
    %c3_47 = arith.constant 3 : index
    %c0_48 = arith.constant 0 : index
    %c0_49 = arith.constant 0 : index
    %63 = vector.load %arg1[%c2_46, %c3_47, %c0_48, %c0_49] : memref<4x4x2x128xf32, #tpu.memory_space<vmem>>, vector<2x1x2x128xf32>
    %c3_50 = arith.constant 3 : index
    %c0_51 = arith.constant 0 : index
    %c0_52 = arith.constant 0 : index
    %c0_53 = arith.constant 0 : index
    %64 = vector.load %arg2[%c3_50, %c0_51, %c0_52, %c0_53] : memref<8x4x2x128xf32, #tpu.memory_space<vmem>>, vector<1x4x2x128xf32>
    %c7 = arith.constant 7 : index
    %c0_54 = arith.constant 0 : index
    %c0_55 = arith.constant 0 : index
    %c0_56 = arith.constant 0 : index
    %65 = vector.load %arg2[%c7, %c0_54, %c0_55, %c0_56] : memref<8x4x2x128xf32, #tpu.memory_space<vmem>>, vector<1x4x2x128xf32>
    %66 = vector.broadcast %62 : vector<2x1x2x128xf32> to vector<2x4x2x128xf32>
    %67 = vector.broadcast %64 : vector<1x4x2x128xf32> to vector<2x4x2x128xf32>
    %68 = arith.mulf %66, %67 : vector<2x4x2x128xf32>
    %69 = arith.addf %53, %68 : vector<2x4x2x128xf32>
    %70 = vector.broadcast %63 : vector<2x1x2x128xf32> to vector<2x4x2x128xf32>
    %71 = vector.broadcast %65 : vector<1x4x2x128xf32> to vector<2x4x2x128xf32>
    %72 = arith.mulf %70, %71 : vector<2x4x2x128xf32>
    %73 = arith.subf %69, %72 : vector<2x4x2x128xf32>
    %74 = vector.broadcast %62 : vector<2x1x2x128xf32> to vector<2x4x2x128xf32>
    %75 = vector.broadcast %65 : vector<1x4x2x128xf32> to vector<2x4x2x128xf32>
    %76 = arith.mulf %74, %75 : vector<2x4x2x128xf32>
    %77 = arith.addf %61, %76 : vector<2x4x2x128xf32>
    %78 = vector.broadcast %63 : vector<2x1x2x128xf32> to vector<2x4x2x128xf32>
    %79 = vector.broadcast %64 : vector<1x4x2x128xf32> to vector<2x4x2x128xf32>
    %80 = arith.mulf %78, %79 : vector<2x4x2x128xf32>
    %81 = arith.addf %77, %80 : vector<2x4x2x128xf32>
    %c0_57 = arith.constant 0 : index
    %c0_58 = arith.constant 0 : index
    %c0_59 = arith.constant 0 : index
    %c0_60 = arith.constant 0 : index
    %82 = vector.load %arg3[%c0_57, %c0_58, %c0_59, %c0_60] : memref<4x4x2x128xf32, #tpu.memory_space<vmem>>, vector<2x4x2x128xf32>
    tpu.vector_store %arg3[%c0_57, %c0_58, %c0_59, %c0_60], %73 {strides = array<i32>} : memref<4x4x2x128xf32, #tpu.memory_space<vmem>>, vector<2x4x2x128xf32>,
    %c2_61 = arith.constant 2 : index
    %c0_62 = arith.constant 0 : index
    %c0_63 = arith.constant 0 : index
    %c0_64 = arith.constant 0 : index
    %83 = vector.load %arg3[%c2_61, %c0_62, %c0_63, %c0_64] : memref<4x4x2x128xf32, #tpu.memory_space<vmem>>, vector<2x4x2x128xf32>
    tpu.vector_store %arg3[%c2_61, %c0_62, %c0_63, %c0_64], %81 {strides = array<i32>} : memref<4x4x2x128xf32, #tpu.memory_space<vmem>>, vector<2x4x2x128xf32>,
    return
  }
  func.func @transform_0(%arg0: i32) -> (i32, i32, i32, i32) {
    %c0_i32 = arith.constant 0 : i32
    %c0_i32_0 = arith.constant 0 : i32
    %c0_i32_1 = arith.constant 0 : i32
    %c0_i32_2 = arith.constant 0 : i32
    return %c0_i32, %c0_i32_0, %arg0, %c0_i32_1 : i32, i32, i32, i32
  }
  func.func @transform_1(%arg0: i32) -> (i32, i32, i32, i32) {
    %c0_i32 = arith.constant 0 : i32
    %c0_i32_0 = arith.constant 0 : i32
    %c0_i32_1 = arith.constant 0 : i32
    %c0_i32_2 = arith.constant 0 : i32
    return %c0_i32, %c0_i32_0, %arg0, %c0_i32_1 : i32, i32, i32, i32
  }
  func.func @transform_2(%arg0: i32) -> (i32, i32, i32, i32) {
    %c0_i32 = arith.constant 0 : i32
    %c0_i32_0 = arith.constant 0 : i32
    %c0_i32_1 = arith.constant 0 : i32
    %c0_i32_2 = arith.constant 0 : i32
    return %c0_i32, %c0_i32_0, %arg0, %c0_i32_1 : i32, i32, i32, i32
  }
}

</mosaic_0001>

<bundles_post_ra>
// kernel: fourier_layer_forward.1
= control target key start
LH: loop header
LB: loop body
LE: loop exit
PB: predicated region body
PF: predicated region fallthrough
CT: control target
= control target key end

     0   :  { %s980_s0 = inlined_call_operand.vmem [shape: f32[4,4,2,128], index: 0, kind: input, shape index: {}]   ;;  %s981_s1 = inlined_call_operand.vmem [shape: f32[8,4,2,128], index: 1, kind: input, shape index: {}]   ;;  %s982_s2 = inlined_call_operand.vmem [shape: f32[4,4,2,128], index: 2, kind: output, shape index: {}]  }
   0x1   :  { %v418_v0 = vld [vmem:[%s980_s0] sm:$0x3]  ;;  %v423_v1 = vld [vmem:[%s980_s0 + $0x10] sm:$0x3]  ;;  %v440_v5 = vld [vmem:[%s980_s0 + $0x2] sm:$0x3] }
   0x2   :  { %v428_v2 = vld [vmem:[%s981_s1] sm:$0x3]  ;;  %1002 = vst [vmem:[#allocation4_spill] sm:$0xff] %v440_v5  ;;  %v445_v6 = vld [vmem:[%s980_s0 + $0x12] sm:$0x3] }
   0x3   :  { %1000 = vst [vmem:[#allocation2_spill] sm:$0xff] %v428_v2  ;;  %v433_v3 = vld [vmem:[%s981_s1 + $0x20] sm:$0x3]  ;;  %v25_v4 = vmul.f32 %v428_v2, %v418_v0  ;;  %1003 = vst [vmem:[#allocation5_spill] sm:$0xff] %v445_v6  ;;  %v73_v7 = vmul.f32 %v423_v1, %v428_v2  ;;  %v454_v9 = vld [vmem:[%s981_s1 + $0x8] sm:$0x3] }
   0x4   :  { %1001 = vst [vmem:[#allocation3_spill] sm:$0xff] %v433_v3  ;;  %v41_v8 = vmul.f32 %v433_v3, %v423_v1  ;;  %1004 = vst [vmem:[#allocation6_spill] sm:$0xff] %v454_v9  ;;  %v459_v10 = vld [vmem:[%s981_s1 + $0x28] sm:$0x3]  ;;  %v464_v11 = vld [vmem:[%s980_s0 + $0x4] sm:$0x3]  ;;  %v57_v12 = vmul.f32 %v433_v3, %v418_v0  ;;  %v105_v13 = vmul.f32 %v454_v9, %v440_v5 }
   0x5   :  { %1005 = vst [vmem:[#allocation7_spill] sm:$0xff] %v459_v10  ;;  %1006 = vst [vmem:[#allocation8_spill] sm:$0xff] %v464_v11  ;;  %v473_v14 = vld [vmem:[%s980_s0 + $0x14] sm:$0x3]  ;;  %v478_v15 = vld [vmem:[%s981_s1 + $0x10] sm:$0x3]  ;;  %v121_v18 = vmul.f32 %v459_v10, %v445_v6  ;;  %v137_v22 = vmul.f32 %v459_v10, %v440_v5  ;;  %v506_v23 = vmul.f32 %v454_v9, %v445_v6 }
   0x6   :  { %1007 = vst [vmem:[#allocation9_spill] sm:$0xff] %v473_v14  ;;  %1008 = vst [vmem:[#allocation10_spill] sm:$0xff] %v478_v15  ;;  %v483_v16 = vld [vmem:[%s981_s1 + $0x30] sm:$0x3]  ;;  %v49_v17 = vsub.f32 %v25_v4, %v41_v8  ;;  %v490_v19 = vld [vmem:[%s980_s0 + $0x6] sm:$0x3]  ;;  %v185_v24 = vmul.f32 %v478_v15, %v464_v11  ;;  %v81_v29 = vadd.f32 %v73_v7, %v57_v12 }
   0x7   :  { %1009 = vst [vmem:[#allocation11_spill] sm:$0xff] %v483_v16  ;;  %v495_v20 = vld [vmem:[%s980_s0 + $0x16] sm:$0x3]  ;;  %v500_v21 = vld [vmem:[%s981_s1 + $0x18] sm:$0x3]  ;;  %v201_v25 = vmul.f32 %v483_v16, %v473_v14  ;;  %v545_v36 = vmul.f32 %v483_v16, %v464_v11  ;;  %v565_v41 = vmul.f32 %v478_v15, %v473_v14 }
   0x8   :  { %1010 = vst [vmem:[#allocation12_spill] sm:$0xff] %v495_v20  ;;  %1011 = vst [vmem:[#allocation13_spill] sm:$0xff] %v500_v21  ;;  %v265_v26 = vmul.f32 %v500_v21, %v490_v19  ;;  %v517_v27 = vld [vmem:[%s981_s1 + $0x2] sm:$0x3]  ;;  %v113_v30 = vadd.f32 %v105_v13, %v49_v17  ;;  %v527_v31 = vld [vmem:[%s981_s1 + $0x38] sm:$0x3]  ;;  %v569_v42 = vmul.f32 %v500_v21, %v495_v20 }
   0x9   :  { %v522_v28 = vld [vmem:[%s981_s1 + $0x22] sm:$0x3]  ;;  %v26_v32 = vmul.f32 %v517_v27, %v418_v0  ;;  %v536_v34 = vld [vmem:[%s981_s1 + $0xa] sm:$0x3]  ;;  %v541_v35 = vld [vmem:[%s981_s1 + $0x12] sm:$0x3]  ;;  %v549_v37 = vmul.f32 %v527_v31, %v495_v20  ;;  %v611_v56 = vadd.f32 %v137_v22, %v81_v29 }
   0xa   :  { %v42_v33 = vmul.f32 %v522_v28, %v423_v1  ;;  %1012 = vst [vmem:[#allocation14_spill] sm:$0xff] %v545_v36  ;;  %v554_v38 = vld [vmem:[%s981_s1 + $0x2a] sm:$0x3]  ;;  %v106_v39 = vmul.f32 %v536_v34, %v440_v5  ;;  %v561_v40 = vld [vmem:[%s981_s1 + $0x1a] sm:$0x3]  ;;  %1013 = vst [vmem:[#allocation15_spill] sm:$0xff] %v565_v41  ;;  %v129_v43 = vsub.f32 %v113_v30, %v121_v18 }
   0xb   :  { %1014 = vst [vmem:[#allocation16_spill] sm:$0xff] %v569_v42  ;;  %v122_v45 = vmul.f32 %v554_v38, %v445_v6  ;;  %v186_v46 = vmul.f32 %v541_v35, %v464_v11  ;;  %v578_v47 = vld [vmem:[%s981_s1 + $0x4] sm:$0x3]  ;;  %v588_v49 = vld [vmem:[%s981_s1 + $0xc] sm:$0x3]  ;;  %v266_v60 = vmul.f32 %v561_v40, %v490_v19 }
   0xc   :  { %v50_v44 = vsub.f32 %v26_v32, %v42_v33  ;;  %v583_v48 = vld [vmem:[%s981_s1 + $0x24] sm:$0x3]  ;;  %v593_v50 = vld [vmem:[%s981_s1 + $0x32] sm:$0x3]  ;;  %v598_v51 = vld [vmem:[%s981_s1 + $0x3a] sm:$0x3]  ;;  %v27_v52 = vmul.f32 %v578_v47, %v418_v0  ;;  %v107_v54 = vmul.f32 %v588_v49, %v440_v5  ;;  %v193_v57 = vadd.f32 %v185_v24, %v129_v43 }
   0xd   :  { %v43_v53 = vmul.f32 %v583_v48, %v423_v1  ;;  %v609_v55 = vld [vmem:[%s981_s1 + $0x14] sm:$0x3]  ;;  %v202_v59 = vmul.f32 %v593_v50, %v473_v14  ;;  %v620_v61 = vld [vmem:[%s981_s1 + $0x2c] sm:$0x3]  ;;  %v625_v62 = vld [vmem:[%s981_s1 + $0x1c] sm:$0x3]  ;;  %v634_v4 = vmul.f32 %v598_v51, %v495_v20 }
   0xe   :  { %v114_v58 = vadd.f32 %v106_v39, %v50_v44  ;;  %v630_v63 = vld [vmem:[%s981_s1 + $0x6] sm:$0x3]  ;;  %v123_v8 = vmul.f32 %v620_v61, %v445_v6  ;;  %v187_v12 = vmul.f32 %v609_v55, %v464_v11  ;;  %v648_v17 = vld [vmem:[%s981_s1 + $0xe] sm:$0x3]  ;;  %v209_v18 = vsub.f32 %v193_v57, %v201_v25  ;;  %v653_v24 = vld [vmem:[%s981_s1 + $0x34] sm:$0x3] }
   0xf   :  { %v51_v7 = vsub.f32 %v27_v52, %v43_v53  ;;  %v643_v13 = vld [vmem:[%s981_s1 + $0x26] sm:$0x3]  ;;  %v28_v29 = vmul.f32 %v630_v63, %v418_v0  ;;  %v662_v32 = vld [vmem:[%s981_s1 + $0x16] sm:$0x3]  ;;  %v203_v25 = vmul.f32 %v653_v24, %v473_v14  ;;  %v267_v39 = vmul.f32 %v625_v62, %v490_v19  ;;  %v671_v43 = vld [vmem:[%s981_s1 + $0x2e] sm:$0x3] }
  0x10   :  { %v130_v22 = vsub.f32 %v114_v58, %v122_v45  ;;  %v44_v30 = vmul.f32 %v643_v13, %v423_v1  ;;  %v108_v44 = vmul.f32 %v648_v17, %v440_v5  ;;  %v678_v45 = vld [vmem:[%s980_s0 + $0x8] sm:$0x3]  ;;  %v683_v52 = vld [vmem:[%s980_s0 + $0x18] sm:$0x3]  ;;  %v273_v53 = vadd.f32 %v265_v26, %v209_v18  ;;  %v688_v57 = vld [vmem:[%s981_s1 + $0x3c] sm:$0x3] }
  0x11   :  { %v115_v33 = vadd.f32 %v107_v54, %v51_v7  ;;  %v124_v7 = vmul.f32 %v671_v43, %v445_v6  ;;  %v695_v42 = vld [vmem:[%s981_s1 + $0x1e] sm:$0x3]  ;;  %v700_v41 = vld [vmem:[%s980_s0 + $0xa] sm:$0x3]  ;;  %v188_v18 = vmul.f32 %v662_v32, %v464_v11 }
  0x12   :  { %v194_v54 = vadd.f32 %v186_v46, %v130_v22  ;;  %v52_v58 = vsub.f32 %v28_v29, %v44_v30  ;;  %v283_v46 = vmul.f32 %v688_v57, %v495_v20  ;;  %v29_v22 = vmul.f32 %v428_v2, %v678_v45  ;;  %v711_v29 = vld [vmem:[%s980_s0 + $0x1a] sm:$0x3]  ;;  %v724_v2 = vld [vmem:[%s980_s0 + $0xc] sm:$0x3] }
  0x13   :  { %v131_v26 = vsub.f32 %v115_v33, %v123_v8  ;;  %v289_v30 = vsub.f32 %v273_v53, %v549_v37  ;;  %v717_v8 = vld [vmem:[%s981_s1 + $0x36] sm:$0x3]  ;;  %v45_v33 = vmul.f32 %v433_v3, %v683_v52  ;;  %v268_v37 = vmul.f32 %v695_v42, %v490_v19 }
  0x14   :  { %v210_v6 = vsub.f32 %v194_v54, %v202_v59  ;;  %v116_v5 = vadd.f32 %v108_v44, %v52_v58  ;;  %v204_v36 = vmul.f32 %v717_v8, %v473_v14  ;;  %v109_v59 = vmul.f32 %v454_v9, %v700_v41  ;;  %v738_v54 = vld [vmem:[%s981_s1 + $0x3e] sm:$0x3] }
  0x15   :  { %v195_v11 = vadd.f32 %v187_v12, %v131_v26  ;;  %329 = vst [vmem:[%s982_s2] sm:$0x3] %v289_v30  ;;  %v53_v12 = vsub.f32 %v29_v22, %v45_v33  ;;  %v125_v58 = vmul.f32 %v459_v10, %v711_v29  ;;  %v745_v26 = vld [vmem:[%s980_s0 + $0x1c] sm:$0x3]  ;;  %v750_v30 = vld [vmem:[%s980_s0 + $0xe] sm:$0x3] }
  0x16   :  { %v274_v44 = vadd.f32 %v266_v60, %v210_v6  ;;  %v132_v53 = vsub.f32 %v116_v5, %v124_v7  ;;  %v284_v6 = vmul.f32 %v738_v54, %v495_v20  ;;  %v189_v60 = vmul.f32 %v478_v15, %v724_v2  ;;  %v762_v10 = vld [vmem:[%s980_s0 + $0x1e] sm:$0x3] }
  0x17   :  { %v211_v5 = vsub.f32 %v195_v11, %v203_v25  ;;  %v30_v7 = vmul.f32 %v517_v27, %v678_v45  ;;  %v117_v9 = vadd.f32 %v109_v59, %v53_v12  ;;  %v46_v11 = vmul.f32 %v522_v28, %v683_v52 }
  0x18   :  { %v290_v22 = vsub.f32 %v274_v44, %v634_v4  ;;  %v196_v33 = vadd.f32 %v188_v18, %v132_v53  ;;  %v205_v3 = vmul.f32 %v483_v16, %v745_v26  ;;  %v269_v15 = vmul.f32 %v500_v21, %v750_v30 }
  0x19   :  { %v275_v25 = vadd.f32 %v267_v39, %v211_v5  ;;  %v110_v4 = vmul.f32 %v536_v34, %v700_v41  ;;  %v133_v59 = vsub.f32 %v117_v9, %v125_v58  ;;  %v54_v44 = vsub.f32 %v30_v7, %v46_v11 }
  0x1a   :  { %330 = vst [vmem:[%s982_s2 + $0x2] sm:$0x3] %v290_v22  ;;  %v212_v18 = vsub.f32 %v196_v33, %v204_v36  ;;  %v126_v53 = vmul.f32 %v554_v38, %v711_v29  ;;  %v285_v12 = vmul.f32 %v527_v31, %v762_v10  ;;  %v190_v5 = vmul.f32 %v541_v35, %v724_v2 }
  0x1b   :  { %v291_v39 = vsub.f32 %v275_v25, %v283_v46  ;;  %v31_v21 = vmul.f32 %v578_v47, %v678_v45  ;;  %v197_v20 = vadd.f32 %v189_v60, %v133_v59  ;;  %v118_v14 = vadd.f32 %v110_v4, %v54_v44 }
  0x1c   :  { %v276_v16 = vadd.f32 %v268_v37, %v212_v18  ;;  %v47_v9 = vmul.f32 %v583_v48, %v683_v52  ;;  %v206_v36 = vmul.f32 %v593_v50, %v745_v26  ;;  %v270_v46 = vmul.f32 %v561_v40, %v750_v30 }
  0x1d   :  { %331 = vst [vmem:[%s982_s2 + $0x4] sm:$0x3] %v291_v39  ;;  %v111_v58 = vmul.f32 %v588_v49, %v700_v41  ;;  %v127_v37 = vmul.f32 %v620_v61, %v711_v29  ;;  %v213_v7 = vsub.f32 %v197_v20, %v205_v3  ;;  %v134_v22 = vsub.f32 %v118_v14, %v126_v53 }
  0x1e   :  { %v292_v60 = vsub.f32 %v276_v16, %v284_v6  ;;  %v55_v33 = vsub.f32 %v31_v21, %v47_v9  ;;  %v286_v11 = vmul.f32 %v598_v51, %v762_v10  ;;  %v191_v25 = vmul.f32 %v609_v55, %v724_v2 }
  0x1f   :  { %v32_v4 = vmul.f32 %v630_v63, %v678_v45  ;;  %v48_v18 = vmul.f32 %v643_v13, %v683_v52  ;;  %v277_v16 = vadd.f32 %v269_v15, %v213_v7  ;;  %v198_v3 = vadd.f32 %v190_v5, %v134_v22 }
  0x20   :  { %332 = vst [vmem:[%s982_s2 + $0x6] sm:$0x3] %v292_v60  ;;  %v119_v14 = vadd.f32 %v111_v58, %v55_v33  ;;  %v112_v20 = vmul.f32 %v648_v17, %v700_v41  ;;  %v207_v21 = vmul.f32 %v653_v24, %v745_v26  ;;  %v271_v6 = vmul.f32 %v625_v62, %v750_v30 }
  0x21   :  { %v56_v59 = vsub.f32 %v32_v4, %v48_v18  ;;  %v128_v44 = vmul.f32 %v671_v43, %v711_v29  ;;  %v293_v53 = vsub.f32 %v277_v16, %v285_v12  ;;  %v214_v39 = vsub.f32 %v198_v3, %v206_v36  ;;  %v1015_v4 = vld [vmem:[#allocation14_spill] sm:$0xff]  ;;  %v1016_v3 = vld [vmem:[#allocation4_spill] sm:$0xff] }
  0x22   :  { %v135_v9 = vsub.f32 %v119_v14, %v127_v37  ;;  %v287_v15 = vmul.f32 %v688_v57, %v762_v10  ;;  %v192_v58 = vmul.f32 %v662_v32, %v724_v2  ;;  %v208_v60 = vmul.f32 %v717_v8, %v745_v26 }
  0x23   :  { %v120_v5 = vadd.f32 %v112_v20, %v56_v59  ;;  %v161_v7 = vadd.f32 %v506_v23, %v611_v56  ;;  %333 = vst [vmem:[%s982_s2 + $0x8] sm:$0x3] %v293_v53  ;;  %v278_v12 = vadd.f32 %v270_v46, %v214_v39  ;;  %v58_v37 = vmul.f32 %v522_v28, %v418_v0  ;;  %v1017_v46 = vld [vmem:[#allocation5_spill] sm:$0xff]  ;;  %v1018_v39 = vld [vmem:[#allocation15_spill] sm:$0xff] }
  0x24   :  { %v199_v36 = vadd.f32 %v191_v25, %v135_v9  ;;  %v74_v22 = vmul.f32 %v423_v1, %v517_v27  ;;  %v297_v16 = vmul.f32 %v527_v31, %v490_v19  ;;  %v138_v23 = vmul.f32 %v554_v38, %v1016_v3 }
  0x25   :  { %v136_v33 = vsub.f32 %v120_v5, %v128_v44  ;;  %v225_v18 = vadd.f32 %v1015_v4, %v161_v7  ;;  %v294_v56 = vsub.f32 %v278_v12, %v286_v11  ;;  %v154_v25 = vmul.f32 %v536_v34, %v1017_v46 }
  0x26   :  { %v215_v14 = vsub.f32 %v199_v36, %v207_v21  ;;  %v82_v20 = vadd.f32 %v74_v22, %v58_v37  ;;  %v272_v53 = vmul.f32 %v695_v42, %v750_v30  ;;  %v288_v44 = vmul.f32 %v738_v54, %v762_v10  ;;  %v1019_v21 = vld [vmem:[#allocation8_spill] sm:$0xff] }
  0x27   :  { %v200_v59 = vadd.f32 %v192_v58, %v136_v33  ;;  %v241_v9 = vadd.f32 %v1018_v39, %v225_v18  ;;  %334 = vst [vmem:[%s982_s2 + $0xa] sm:$0x3] %v294_v56  ;;  %v218_v7 = vmul.f32 %v593_v50, %v1019_v21  ;;  %v59_v58 = vmul.f32 %v583_v48, %v418_v0  ;;  %v1020_v18 = vld [vmem:[#allocation9_spill] sm:$0xff]  ;;  %v1021_v56 = vld [vmem:[#allocation16_spill] sm:$0xff] }
  0x28   :  { %v279_v5 = vadd.f32 %v271_v6, %v215_v14  ;;  %v146_v11 = vadd.f32 %v138_v23, %v82_v20  ;;  %v75_v37 = vmul.f32 %v423_v1, %v578_v47  ;;  %v139_v22 = vmul.f32 %v620_v61, %v1016_v3 }
  0x29   :  { %v216_v12 = vsub.f32 %v200_v59, %v208_v60  ;;  %v305_v36 = vadd.f32 %v297_v16, %v241_v9  ;;  %v234_v6 = vmul.f32 %v541_v35, %v1020_v18  ;;  %v155_v39 = vmul.f32 %v588_v49, %v1017_v46 }
  0x2a   :  { %v295_v33 = vsub.f32 %v279_v5, %v287_v15  ;;  %v162_v4 = vadd.f32 %v154_v25, %v146_v11  ;;  %v83_v20 = vadd.f32 %v75_v37, %v59_v58  ;;  %v298_v16 = vmul.f32 %v598_v51, %v490_v19  ;;  %v1023_v37 = vld [vmem:[#allocation3_spill] sm:$0xff] }
  0x2b   :  { %v280_v23 = vadd.f32 %v272_v53, %v216_v12  ;;  %v321_v14 = vadd.f32 %v1021_v56, %v305_v36  ;;  %v219_v15 = vmul.f32 %v653_v24, %v1019_v21  ;;  %v60_v25 = vmul.f32 %v643_v13, %v418_v0 }
  0x2c   :  { %335 = vst [vmem:[%s982_s2 + $0xc] sm:$0x3] %v295_v33  ;;  %v226_v60 = vadd.f32 %v218_v7, %v162_v4  ;;  %v147_v53 = vadd.f32 %v139_v22, %v83_v20  ;;  %v76_v9 = vmul.f32 %v423_v1, %v630_v63  ;;  %v140_v5 = vmul.f32 %v671_v43, %v1016_v3  ;;  %v1022_v7 = vld [vmem:[#allocation12_spill] sm:$0xff]  ;;  %v1024_v33 = vld [vmem:[#allocation2_spill] sm:$0xff] }
  0x2d   :  { %v296_v59 = vsub.f32 %v280_v23, %v288_v44  ;;  %392 = vst [vmem:[%s982_s2 + $0x10] sm:$0x3] %v321_v14  ;;  %v314_v58 = vmul.f32 %v561_v40, %v1022_v7  ;;  %v235_v12 = vmul.f32 %v609_v55, %v1020_v18  ;;  %v299_v44 = vmul.f32 %v688_v57, %v490_v19 }
  0x2e   :  { %v242_v11 = vadd.f32 %v234_v6, %v226_v60  ;;  %v163_v0 = vadd.f32 %v155_v39, %v147_v53  ;;  %v84_v36 = vadd.f32 %v76_v9, %v60_v25  ;;  %v156_v1 = vmul.f32 %v648_v17, %v1017_v46  ;;  %v1025_v6 = vld [vmem:[#allocation7_spill] sm:$0xff]  ;;  %v1026_v25 = vld [vmem:[#allocation6_spill] sm:$0xff] }
  0x2f   :  { %336 = vst [vmem:[%s982_s2 + $0xe] sm:$0x3] %v296_v59  ;;  %v61_v22 = vmul.f32 %v1023_v37, %v678_v45  ;;  %v77_v4 = vmul.f32 %v683_v52, %v1024_v33  ;;  %v141_v23 = vmul.f32 %v1025_v6, %v700_v41  ;;  %v315_v14 = vmul.f32 %v625_v62, %v1022_v7 }
  0x30   :  { %v306_v3 = vadd.f32 %v298_v16, %v242_v11  ;;  %v227_v56 = vadd.f32 %v219_v15, %v163_v0  ;;  %v148_v20 = vadd.f32 %v140_v5, %v84_v36  ;;  %v220_v39 = vmul.f32 %v717_v8, %v1019_v21  ;;  %v1027_v5 = vld [vmem:[#allocation11_spill] sm:$0xff] }
  0x31   :  { %v236_v46 = vmul.f32 %v662_v32, %v1020_v18  ;;  %v85_v16 = vadd.f32 %v77_v4, %v61_v22  ;;  %v157_v59 = vmul.f32 %v1026_v25, %v711_v29  ;;  %v300_v15 = vmul.f32 %v738_v54, %v490_v19 }
  0x32   :  { %v322_v60 = vadd.f32 %v314_v58, %v306_v3  ;;  %v243_v53 = vadd.f32 %v235_v12, %v227_v56  ;;  %v164_v9 = vadd.f32 %v156_v1, %v148_v20  ;;  %v62_v11 = vmul.f32 %v522_v28, %v678_v45  ;;  %v1028_v28 = vld [vmem:[#allocation10_spill] sm:$0xff]  ;;  %v1029_v56 = vld [vmem:[#allocation13_spill] sm:$0xff] }
  0x33   :  { %v149_v21 = vadd.f32 %v141_v23, %v85_v16  ;;  %v221_v18 = vmul.f32 %v1027_v5, %v724_v2  ;;  %v78_v58 = vmul.f32 %v683_v52, %v517_v27  ;;  %v142_v12 = vmul.f32 %v554_v38, %v700_v41 }
  0x34   :  { %393 = vst [vmem:[%s982_s2 + $0x12] sm:$0x3] %v322_v60  ;;  %v307_v0 = vadd.f32 %v299_v44, %v243_v53  ;;  %v228_v36 = vadd.f32 %v220_v39, %v164_v9  ;;  %v316_v19 = vmul.f32 %v695_v42, %v1022_v7  ;;  %v237_v1 = vmul.f32 %v1028_v28, %v745_v26 }
  0x35   :  { %v165_v3 = vadd.f32 %v157_v59, %v149_v21  ;;  %v301_v37 = vmul.f32 %v527_v31, %v750_v30  ;;  %v86_v22 = vadd.f32 %v78_v58, %v62_v11  ;;  %v158_v33 = vmul.f32 %v536_v34, %v711_v29 }
  0x36   :  { %v323_v27 = vadd.f32 %v315_v14, %v307_v0  ;;  %v244_v4 = vadd.f32 %v236_v46, %v228_v36  ;;  %v63_v38 = vmul.f32 %v583_v48, %v678_v45  ;;  %v79_v44 = vmul.f32 %v683_v52, %v578_v47 }
  0x37   :  { %v229_v7 = vadd.f32 %v221_v18, %v165_v3  ;;  %v150_v6 = vadd.f32 %v142_v12, %v86_v22  ;;  %v222_v23 = vmul.f32 %v593_v50, %v724_v2  ;;  %v143_v31 = vmul.f32 %v620_v61, %v700_v41 }
  0x38   :  { %394 = vst [vmem:[%s982_s2 + $0x14] sm:$0x3] %v323_v27  ;;  %v308_v34 = vadd.f32 %v300_v15, %v244_v4  ;;  %v317_v14 = vmul.f32 %v1029_v56, %v762_v10  ;;  %v87_v48 = vadd.f32 %v79_v44, %v63_v38  ;;  %v159_v47 = vmul.f32 %v588_v49, %v711_v29 }
  0x39   :  { %v245_v20 = vadd.f32 %v237_v1, %v229_v7  ;;  %v166_v39 = vadd.f32 %v158_v33, %v150_v6  ;;  %v238_v50 = vmul.f32 %v541_v35, %v745_v26  ;;  %v223_v61 = vmul.f32 %v653_v24, %v724_v2 }
  0x3a   :  { %v324_v60 = vadd.f32 %v316_v19, %v308_v34  ;;  %v151_v46 = vadd.f32 %v143_v31, %v87_v48  ;;  %v64_v16 = vmul.f32 %v643_v13, %v678_v45  ;;  %v80_v25 = vmul.f32 %v683_v52, %v630_v63 }
  0x3b   :  { %v309_v59 = vadd.f32 %v301_v37, %v245_v20  ;;  %v230_v53 = vadd.f32 %v222_v23, %v166_v39  ;;  %v302_v49 = vmul.f32 %v598_v51, %v750_v30  ;;  %v144_v9 = vmul.f32 %v671_v43, %v700_v41 }
  0x3c   :  { %395 = vst [vmem:[%s982_s2 + $0x16] sm:$0x3] %v324_v60  ;;  %v167_v35 = vadd.f32 %v159_v47, %v151_v46  ;;  %v239_v24 = vmul.f32 %v609_v55, %v745_v26  ;;  %v88_v13 = vadd.f32 %v80_v25, %v64_v16  ;;  %v160_v63 = vmul.f32 %v648_v17, %v711_v29 }
  0x3d   :  { %v325_v45 = vadd.f32 %v317_v14, %v309_v59  ;;  %v246_v52 = vadd.f32 %v238_v50, %v230_v53  ;;  %v318_v51 = vmul.f32 %v561_v40, %v762_v10  ;;  %v303_v41 = vmul.f32 %v688_v57, %v750_v30 }
  0x3e   :  { %v231_v15 = vadd.f32 %v223_v61, %v167_v35  ;;  %v152_v43 = vadd.f32 %v144_v9, %v88_v13  ;;  %v224_v11 = vmul.f32 %v717_v8, %v724_v2  ;;  %v319_v17 = vmul.f32 %v625_v62, %v762_v10 }
  0x3f   :  { %396 = vst [vmem:[%s982_s2 + $0x18] sm:$0x3] %v325_v45  ;;  %v310_v55 = vadd.f32 %v302_v49, %v246_v52  ;;  %v240_v40 = vmul.f32 %v662_v32, %v745_v26  ;;  %v304_v58 = vmul.f32 %v738_v54, %v750_v30  ;;  %v320_v12 = vmul.f32 %v695_v42, %v762_v10 }
  0x40   :  { %v247_v21 = vadd.f32 %v239_v24, %v231_v15  ;;  %v168_v29 = vadd.f32 %v160_v63, %v152_v43 }
  0x41   :  { %v326_v5 = vadd.f32 %v318_v51, %v310_v55 }
  0x42   :  { %v311_v18 = vadd.f32 %v303_v41, %v247_v21  ;;  %v232_v57 = vadd.f32 %v224_v11, %v168_v29 }
  0x43   :  { %397 = vst [vmem:[%s982_s2 + $0x1a] sm:$0x3] %v326_v5 }
  0x44   :  { %v327_v2 = vadd.f32 %v319_v17, %v311_v18  ;;  %v248_v8 = vadd.f32 %v240_v40, %v232_v57 }
  0x46   :  { %398 = vst [vmem:[%s982_s2 + $0x1c] sm:$0x3] %v327_v2  ;;  %v312_v62 = vadd.f32 %v304_v58, %v248_v8 }
  0x48   :  { %v328_v32 = vadd.f32 %v320_v12, %v312_v62 }
  0x4a   :  { %399 = vst [vmem:[%s982_s2 + $0x1e] sm:$0x3] %v328_v32 }

// kernel: reverse.1
= control target key start
LH: loop header
LB: loop body
LE: loop exit
PB: predicated region body
PF: predicated region fallthrough
CT: control target
= control target key end

     0   :  { %s1352_s0 = inlined_call_operand.vmem [shape: f32[2,4,16,16,7], index: 0, kind: input, shape index: {}]   ;;  %s1353_s1 = inlined_call_operand.vmem [shape: f32[2,4,16,16,7], index: 1, kind: output, shape index: {}]  }
   0x1   :  { %v448_v0 = vld [vmem:[%s1352_s0 + $0x60] sm:$0xff]  ;;  %v451_v2 = vld [vmem:[%s1352_s0 + $0xd0] sm:$0xff]  ;;  %v558_v56 = vld [vmem:[%s1352_s0 + $0x68] sm:$0xff] }
   0x2   :  { %v449_v1 = vld [vmem:[%s1352_s0 + $0x220] sm:$0xff]  ;;  %4 = vst [vmem:[%s1353_s1] sm:$0xff] %v448_v0  ;;  %452 = vst [vmem:[%s1353_s1 + $0x70] sm:$0xff] %v451_v2  ;;  %v453_v3 = vld [vmem:[%s1352_s0 + $0x290] sm:$0xff] }
   0x3   :  { %450 = vst [vmem:[%s1353_s1 + $0x1c0] sm:$0xff] %v449_v1  ;;  %v455_v4 = vld [vmem:[%s1352_s0 + $0x140] sm:$0xff]  ;;  %454 = vst [vmem:[%s1353_s1 + $0x230] sm:$0xff] %v453_v3  ;;  %v459_v6 = vld [vmem:[%s1352_s0 + $0x1b0] sm:$0xff] }
   0x4   :  { %v457_v5 = vld [vmem:[%s1352_s0 + $0x300] sm:$0xff]  ;;  %456 = vst [vmem:[%s1353_s1 + $0xe0] sm:$0xff] %v455_v4  ;;  %v461_v7 = vld [vmem:[%s1352_s0 + $0x370] sm:$0xff]  ;;  %460 = vst [vmem:[%s1353_s1 + $0x150] sm:$0xff] %v459_v6 }
   0x5   :  { %458 = vst [vmem:[%s1353_s1 + $0x2a0] sm:$0xff] %v457_v5  ;;  %v463_v8 = vld [vmem:[%s1352_s0 + $0x50] sm:$0xff]  ;;  %462 = vst [vmem:[%s1353_s1 + $0x310] sm:$0xff] %v461_v7  ;;  %v467_v10 = vld [vmem:[%s1352_s0 + $0xc0] sm:$0xff] }
   0x6   :  { %464 = vst [vmem:[%s1353_s1 + $0x10] sm:$0xff] %v463_v8  ;;  %v465_v9 = vld [vmem:[%s1352_s0 + $0x210] sm:$0xff]  ;;  %v469_v11 = vld [vmem:[%s1352_s0 + $0x280] sm:$0xff]  ;;  %468 = vst [vmem:[%s1353_s1 + $0x80] sm:$0xff] %v467_v10 }
   0x7   :  { %466 = vst [vmem:[%s1353_s1 + $0x1d0] sm:$0xff] %v465_v9  ;;  %470 = vst [vmem:[%s1353_s1 + $0x240] sm:$0xff] %v469_v11  ;;  %v471_v12 = vld [vmem:[%s1352_s0 + $0x130] sm:$0xff]  ;;  %v475_v14 = vld [vmem:[%s1352_s0 + $0x1a0] sm:$0xff] }
   0x8   :  { %v473_v13 = vld [vmem:[%s1352_s0 + $0x2f0] sm:$0xff]  ;;  %472 = vst [vmem:[%s1353_s1 + $0xf0] sm:$0xff] %v471_v12  ;;  %476 = vst [vmem:[%s1353_s1 + $0x160] sm:$0xff] %v475_v14  ;;  %v477_v15 = vld [vmem:[%s1352_s0 + $0x360] sm:$0xff] }
   0x9   :  { %474 = vst [vmem:[%s1353_s1 + $0x2b0] sm:$0xff] %v473_v13  ;;  %v479_v16 = vld [vmem:[%s1352_s0 + $0x40] sm:$0xff]  ;;  %478 = vst [vmem:[%s1353_s1 + $0x320] sm:$0xff] %v477_v15  ;;  %v483_v18 = vld [vmem:[%s1352_s0 + $0xb0] sm:$0xff] }
   0xa   :  { %v481_v17 = vld [vmem:[%s1352_s0 + $0x200] sm:$0xff]  ;;  %480 = vst [vmem:[%s1353_s1 + $0x20] sm:$0xff] %v479_v16  ;;  %v485_v19 = vld [vmem:[%s1352_s0 + $0x270] sm:$0xff]  ;;  %484 = vst [vmem:[%s1353_s1 + $0x90] sm:$0xff] %v483_v18 }
   0xb   :  { %482 = vst [vmem:[%s1353_s1 + $0x1e0] sm:$0xff] %v481_v17  ;;  %v487_v20 = vld [vmem:[%s1352_s0 + $0x120] sm:$0xff]  ;;  %486 = vst [vmem:[%s1353_s1 + $0x250] sm:$0xff] %v485_v19  ;;  %v491_v22 = vld [vmem:[%s1352_s0 + $0x190] sm:$0xff] }
   0xc   :  { %488 = vst [vmem:[%s1353_s1 + $0x100] sm:$0xff] %v487_v20  ;;  %v489_v21 = vld [vmem:[%s1352_s0 + $0x2e0] sm:$0xff]  ;;  %v493_v23 = vld [vmem:[%s1352_s0 + $0x350] sm:$0xff]  ;;  %492 = vst [vmem:[%s1353_s1 + $0x170] sm:$0xff] %v491_v22 }
   0xd   :  { %490 = vst [vmem:[%s1353_s1 + $0x2c0] sm:$0xff] %v489_v21  ;;  %494 = vst [vmem:[%s1353_s1 + $0x330] sm:$0xff] %v493_v23  ;;  %v495_v24 = vld [vmem:[%s1352_s0 + $0x30] sm:$0xff]  ;;  %v499_v26 = vld [vmem:[%s1352_s0 + $0xa0] sm:$0xff] }
   0xe   :  { %v497_v25 = vld [vmem:[%s1352_s0 + $0x1f0] sm:$0xff]  ;;  %496 = vst [vmem:[%s1353_s1 + $0x30] sm:$0xff] %v495_v24  ;;  %500 = vst [vmem:[%s1353_s1 + $0xa0] sm:$0xff] %v499_v26  ;;  %v501_v27 = vld [vmem:[%s1352_s0 + $0x260] sm:$0xff] }
   0xf   :  { %498 = vst [vmem:[%s1353_s1 + $0x1f0] sm:$0xff] %v497_v25  ;;  %v503_v28 = vld [vmem:[%s1352_s0 + $0x110] sm:$0xff]  ;;  %502 = vst [vmem:[%s1353_s1 + $0x260] sm:$0xff] %v501_v27  ;;  %v507_v30 = vld [vmem:[%s1352_s0 + $0x180] sm:$0xff] }
  0x10   :  { %v505_v29 = vld [vmem:[%s1352_s0 + $0x2d0] sm:$0xff]  ;;  %504 = vst [vmem:[%s1353_s1 + $0x110] sm:$0xff] %v503_v28  ;;  %v509_v31 = vld [vmem:[%s1352_s0 + $0x340] sm:$0xff]  ;;  %508 = vst [vmem:[%s1353_s1 + $0x180] sm:$0xff] %v507_v30 }
  0x11   :  { %506 = vst [vmem:[%s1353_s1 + $0x2d0] sm:$0xff] %v505_v29  ;;  %v511_v32 = vld [vmem:[%s1352_s0 + $0x20] sm:$0xff]  ;;  %510 = vst [vmem:[%s1353_s1 + $0x340] sm:$0xff] %v509_v31  ;;  %v515_v34 = vld [vmem:[%s1352_s0 + $0x90] sm:$0xff] }
  0x12   :  { %512 = vst [vmem:[%s1353_s1 + $0x40] sm:$0xff] %v511_v32  ;;  %v513_v33 = vld [vmem:[%s1352_s0 + $0x1e0] sm:$0xff]  ;;  %v517_v35 = vld [vmem:[%s1352_s0 + $0x250] sm:$0xff]  ;;  %516 = vst [vmem:[%s1353_s1 + $0xb0] sm:$0xff] %v515_v34 }
  0x13   :  { %514 = vst [vmem:[%s1353_s1 + $0x200] sm:$0xff] %v513_v33  ;;  %518 = vst [vmem:[%s1353_s1 + $0x270] sm:$0xff] %v517_v35  ;;  %v519_v36 = vld [vmem:[%s1352_s0 + $0x100] sm:$0xff]  ;;  %v523_v38 = vld [vmem:[%s1352_s0 + $0x170] sm:$0xff] }
  0x14   :  { %v521_v37 = vld [vmem:[%s1352_s0 + $0x2c0] sm:$0xff]  ;;  %520 = vst [vmem:[%s1353_s1 + $0x120] sm:$0xff] %v519_v36  ;;  %524 = vst [vmem:[%s1353_s1 + $0x190] sm:$0xff] %v523_v38  ;;  %v525_v39 = vld [vmem:[%s1352_s0 + $0x330] sm:$0xff] }
  0x15   :  { %522 = vst [vmem:[%s1353_s1 + $0x2e0] sm:$0xff] %v521_v37  ;;  %v527_v40 = vld [vmem:[%s1352_s0 + $0x10] sm:$0xff]  ;;  %526 = vst [vmem:[%s1353_s1 + $0x350] sm:$0xff] %v525_v39  ;;  %v531_v42 = vld [vmem:[%s1352_s0 + $0x80] sm:$0xff] }
  0x16   :  { %v529_v41 = vld [vmem:[%s1352_s0 + $0x1d0] sm:$0xff]  ;;  %528 = vst [vmem:[%s1353_s1 + $0x50] sm:$0xff] %v527_v40  ;;  %v533_v43 = vld [vmem:[%s1352_s0 + $0x240] sm:$0xff]  ;;  %532 = vst [vmem:[%s1353_s1 + $0xc0] sm:$0xff] %v531_v42 }
  0x17   :  { %530 = vst [vmem:[%s1353_s1 + $0x210] sm:$0xff] %v529_v41  ;;  %v535_v44 = vld [vmem:[%s1352_s0 + $0xf0] sm:$0xff]  ;;  %534 = vst [vmem:[%s1353_s1 + $0x280] sm:$0xff] %v533_v43  ;;  %v539_v46 = vld [vmem:[%s1352_s0 + $0x160] sm:$0xff] }
  0x18   :  { %536 = vst [vmem:[%s1353_s1 + $0x130] sm:$0xff] %v535_v44  ;;  %v537_v45 = vld [vmem:[%s1352_s0 + $0x2b0] sm:$0xff]  ;;  %v541_v47 = vld [vmem:[%s1352_s0 + $0x320] sm:$0xff]  ;;  %540 = vst [vmem:[%s1353_s1 + $0x1a0] sm:$0xff] %v539_v46 }
  0x19   :  { %538 = vst [vmem:[%s1353_s1 + $0x2f0] sm:$0xff] %v537_v45  ;;  %542 = vst [vmem:[%s1353_s1 + $0x360] sm:$0xff] %v541_v47  ;;  %v193_v48 = vld [vmem:[%s1352_s0] sm:$0xff]  ;;  %v546_v50 = vld [vmem:[%s1352_s0 + $0x70] sm:$0xff] }
  0x1a   :  { %v544_v49 = vld [vmem:[%s1352_s0 + $0x1c0] sm:$0xff]  ;;  %543 = vst [vmem:[%s1353_s1 + $0x60] sm:$0xff] %v193_v48  ;;  %547 = vst [vmem:[%s1353_s1 + $0xd0] sm:$0xff] %v546_v50  ;;  %v548_v51 = vld [vmem:[%s1352_s0 + $0x230] sm:$0xff] }
  0x1b   :  { %545 = vst [vmem:[%s1353_s1 + $0x220] sm:$0xff] %v544_v49  ;;  %v550_v52 = vld [vmem:[%s1352_s0 + $0xe0] sm:$0xff]  ;;  %549 = vst [vmem:[%s1353_s1 + $0x290] sm:$0xff] %v548_v51  ;;  %v554_v54 = vld [vmem:[%s1352_s0 + $0x150] sm:$0xff] }
  0x1c   :  { %v552_v53 = vld [vmem:[%s1352_s0 + $0x2a0] sm:$0xff]  ;;  %551 = vst [vmem:[%s1353_s1 + $0x140] sm:$0xff] %v550_v52  ;;  %v556_v55 = vld [vmem:[%s1352_s0 + $0x310] sm:$0xff]  ;;  %555 = vst [vmem:[%s1353_s1 + $0x1b0] sm:$0xff] %v554_v54 }
  0x1d   :  { %553 = vst [vmem:[%s1353_s1 + $0x300] sm:$0xff] %v552_v53  ;;  %557 = vst [vmem:[%s1353_s1 + $0x370] sm:$0xff] %v556_v55  ;;  %v560_v57 = vld [vmem:[%s1352_s0 + $0x228] sm:$0xff]  ;;  %v562_v58 = vld [vmem:[%s1352_s0 + $0xd8] sm:$0xff] }
  0x1e   :  { %559 = vst [vmem:[%s1353_s1 + $0x8] sm:$0xff] %v558_v56  ;;  %v564_v59 = vld [vmem:[%s1352_s0 + $0x298] sm:$0xff]  ;;  %561 = vst [vmem:[%s1353_s1 + $0x1c8] sm:$0xff] %v560_v57  ;;  %v566_v60 = vld [vmem:[%s1352_s0 + $0x148] sm:$0xff] }
  0x1f   :  { %563 = vst [vmem:[%s1353_s1 + $0x78] sm:$0xff] %v562_v58  ;;  %565 = vst [vmem:[%s1353_s1 + $0x238] sm:$0xff] %v564_v59  ;;  %v568_v61 = vld [vmem:[%s1352_s0 + $0x308] sm:$0xff]  ;;  %v570_v62 = vld [vmem:[%s1352_s0 + $0x1b8] sm:$0xff] }
  0x20   :  { %567 = vst [vmem:[%s1353_s1 + $0xe8] sm:$0xff] %v566_v60  ;;  %569 = vst [vmem:[%s1353_s1 + $0x2a8] sm:$0xff] %v568_v61  ;;  %v572_v63 = vld [vmem:[%s1352_s0 + $0x378] sm:$0xff]  ;;  %v578_v2 = vld [vmem:[%s1352_s0 + $0xc8] sm:$0xff] }
  0x21   :  { %571 = vst [vmem:[%s1353_s1 + $0x158] sm:$0xff] %v570_v62  ;;  %v574_v0 = vld [vmem:[%s1352_s0 + $0x58] sm:$0xff]  ;;  %573 = vst [vmem:[%s1353_s1 + $0x318] sm:$0xff] %v572_v63  ;;  %v580_v3 = vld [vmem:[%s1352_s0 + $0x288] sm:$0xff] }
  0x22   :  { %v576_v1 = vld [vmem:[%s1352_s0 + $0x218] sm:$0xff]  ;;  %575 = vst [vmem:[%s1353_s1 + $0x18] sm:$0xff] %v574_v0  ;;  %579 = vst [vmem:[%s1353_s1 + $0x88] sm:$0xff] %v578_v2  ;;  %v586_v6 = vld [vmem:[%s1352_s0 + $0x1a8] sm:$0xff] }
  0x23   :  { %577 = vst [vmem:[%s1353_s1 + $0x1d8] sm:$0xff] %v576_v1  ;;  %v582_v4 = vld [vmem:[%s1352_s0 + $0x138] sm:$0xff]  ;;  %581 = vst [vmem:[%s1353_s1 + $0x248] sm:$0xff] %v580_v3  ;;  %v588_v7 = vld [vmem:[%s1352_s0 + $0x368] sm:$0xff] }
  0x24   :  { %583 = vst [vmem:[%s1353_s1 + $0xf8] sm:$0xff] %v582_v4  ;;  %v584_v5 = vld [vmem:[%s1352_s0 + $0x2f8] sm:$0xff]  ;;  %587 = vst [vmem:[%s1353_s1 + $0x168] sm:$0xff] %v586_v6  ;;  %v590_v8 = vld [vmem:[%s1352_s0 + $0x48] sm:$0xff] }
  0x25   :  { %585 = vst [vmem:[%s1353_s1 + $0x2b8] sm:$0xff] %v584_v5  ;;  %589 = vst [vmem:[%s1353_s1 + $0x328] sm:$0xff] %v588_v7  ;;  %v592_v9 = vld [vmem:[%s1352_s0 + $0x208] sm:$0xff]  ;;  %v594_v10 = vld [vmem:[%s1352_s0 + $0xb8] sm:$0xff] }
  0x26   :  { %591 = vst [vmem:[%s1353_s1 + $0x28] sm:$0xff] %v590_v8  ;;  %593 = vst [vmem:[%s1353_s1 + $0x1e8] sm:$0xff] %v592_v9  ;;  %v596_v11 = vld [vmem:[%s1352_s0 + $0x278] sm:$0xff]  ;;  %v598_v12 = vld [vmem:[%s1352_s0 + $0x128] sm:$0xff] }
  0x27   :  { %595 = vst [vmem:[%s1353_s1 + $0x98] sm:$0xff] %v594_v10  ;;  %v600_v13 = vld [vmem:[%s1352_s0 + $0x2e8] sm:$0xff]  ;;  %597 = vst [vmem:[%s1353_s1 + $0x258] sm:$0xff] %v596_v11  ;;  %v602_v14 = vld [vmem:[%s1352_s0 + $0x198] sm:$0xff] }
  0x28   :  { %599 = vst [vmem:[%s1353_s1 + $0x108] sm:$0xff] %v598_v12  ;;  %601 = vst [vmem:[%s1353_s1 + $0x2c8] sm:$0xff] %v600_v13  ;;  %v604_v15 = vld [vmem:[%s1352_s0 + $0x358] sm:$0xff]  ;;  %v610_v18 = vld [vmem:[%s1352_s0 + $0xa8] sm:$0xff] }
  0x29   :  { %v606_v16 = vld [vmem:[%s1352_s0 + $0x38] sm:$0xff]  ;;  %603 = vst [vmem:[%s1353_s1 + $0x178] sm:$0xff] %v602_v14  ;;  %605 = vst [vmem:[%s1353_s1 + $0x338] sm:$0xff] %v604_v15  ;;  %v612_v19 = vld [vmem:[%s1352_s0 + $0x268] sm:$0xff] }
  0x2a   :  { %607 = vst [vmem:[%s1353_s1 + $0x38] sm:$0xff] %v606_v16  ;;  %v608_v17 = vld [vmem:[%s1352_s0 + $0x1f8] sm:$0xff]  ;;  %611 = vst [vmem:[%s1353_s1 + $0xa8] sm:$0xff] %v610_v18  ;;  %v618_v22 = vld [vmem:[%s1352_s0 + $0x188] sm:$0xff] }
  0x2b   :  { %609 = vst [vmem:[%s1353_s1 + $0x1f8] sm:$0xff] %v608_v17  ;;  %613 = vst [vmem:[%s1353_s1 + $0x268] sm:$0xff] %v612_v19  ;;  %v614_v20 = vld [vmem:[%s1352_s0 + $0x118] sm:$0xff]  ;;  %v620_v23 = vld [vmem:[%s1352_s0 + $0x348] sm:$0xff] }
  0x2c   :  { %v616_v21 = vld [vmem:[%s1352_s0 + $0x2d8] sm:$0xff]  ;;  %615 = vst [vmem:[%s1353_s1 + $0x118] sm:$0xff] %v614_v20  ;;  %619 = vst [vmem:[%s1353_s1 + $0x188] sm:$0xff] %v618_v22  ;;  %v622_v24 = vld [vmem:[%s1352_s0 + $0x28] sm:$0xff] }
  0x2d   :  { %617 = vst [vmem:[%s1353_s1 + $0x2d8] sm:$0xff] %v616_v21  ;;  %v624_v25 = vld [vmem:[%s1352_s0 + $0x1e8] sm:$0xff]  ;;  %621 = vst [vmem:[%s1353_s1 + $0x348] sm:$0xff] %v620_v23  ;;  %v626_v26 = vld [vmem:[%s1352_s0 + $0x98] sm:$0xff] }
  0x2e   :  { %623 = vst [vmem:[%s1353_s1 + $0x48] sm:$0xff] %v622_v24  ;;  %625 = vst [vmem:[%s1353_s1 + $0x208] sm:$0xff] %v624_v25  ;;  %v628_v27 = vld [vmem:[%s1352_s0 + $0x258] sm:$0xff]  ;;  %v630_v28 = vld [vmem:[%s1352_s0 + $0x108] sm:$0xff] }
  0x2f   :  { %627 = vst [vmem:[%s1353_s1 + $0xb8] sm:$0xff] %v626_v26  ;;  %629 = vst [vmem:[%s1353_s1 + $0x278] sm:$0xff] %v628_v27  ;;  %v632_v29 = vld [vmem:[%s1352_s0 + $0x2c8] sm:$0xff]  ;;  %v634_v30 = vld [vmem:[%s1352_s0 + $0x178] sm:$0xff] }
  0x30   :  { %631 = vst [vmem:[%s1353_s1 + $0x128] sm:$0xff] %v630_v28  ;;  %v636_v31 = vld [vmem:[%s1352_s0 + $0x338] sm:$0xff]  ;;  %633 = vst [vmem:[%s1353_s1 + $0x2e8] sm:$0xff] %v632_v29  ;;  %v642_v34 = vld [vmem:[%s1352_s0 + $0x88] sm:$0xff] }
  0x31   :  { %635 = vst [vmem:[%s1353_s1 + $0x198] sm:$0xff] %v634_v30  ;;  %637 = vst [vmem:[%s1353_s1 + $0x358] sm:$0xff] %v636_v31  ;;  %v638_v32 = vld [vmem:[%s1352_s0 + $0x18] sm:$0xff]  ;;  %v644_v35 = vld [vmem:[%s1352_s0 + $0x248] sm:$0xff] }
  0x32   :  { %v640_v33 = vld [vmem:[%s1352_s0 + $0x1d8] sm:$0xff]  ;;  %639 = vst [vmem:[%s1353_s1 + $0x58] sm:$0xff] %v638_v32  ;;  %643 = vst [vmem:[%s1353_s1 + $0xc8] sm:$0xff] %v642_v34  ;;  %v650_v38 = vld [vmem:[%s1352_s0 + $0x168] sm:$0xff] }
  0x33   :  { %641 = vst [vmem:[%s1353_s1 + $0x218] sm:$0xff] %v640_v33  ;;  %v646_v36 = vld [vmem:[%s1352_s0 + $0xf8] sm:$0xff]  ;;  %645 = vst [vmem:[%s1353_s1 + $0x288] sm:$0xff] %v644_v35  ;;  %v652_v39 = vld [vmem:[%s1352_s0 + $0x328] sm:$0xff] }
  0x34   :  { %v648_v37 = vld [vmem:[%s1352_s0 + $0x2b8] sm:$0xff]  ;;  %647 = vst [vmem:[%s1353_s1 + $0x138] sm:$0xff] %v646_v36  ;;  %v654_v40 = vld [vmem:[%s1352_s0 + $0x8] sm:$0xff]  ;;  %651 = vst [vmem:[%s1353_s1 + $0x1a8] sm:$0xff] %v650_v38 }
  0x35   :  { %649 = vst [vmem:[%s1353_s1 + $0x2f8] sm:$0xff] %v648_v37  ;;  %653 = vst [vmem:[%s1353_s1 + $0x368] sm:$0xff] %v652_v39  ;;  %v656_v41 = vld [vmem:[%s1352_s0 + $0x1c8] sm:$0xff]  ;;  %v658_v42 = vld [vmem:[%s1352_s0 + $0x78] sm:$0xff] }
  0x36   :  { %655 = vst [vmem:[%s1353_s1 + $0x68] sm:$0xff] %v654_v40  ;;  %v660_v43 = vld [vmem:[%s1352_s0 + $0x238] sm:$0xff]  ;;  %657 = vst [vmem:[%s1353_s1 + $0x228] sm:$0xff] %v656_v41  ;;  %v662_v44 = vld [vmem:[%s1352_s0 + $0xe8] sm:$0xff] }
  0x37   :  { %659 = vst [vmem:[%s1353_s1 + $0xd8] sm:$0xff] %v658_v42  ;;  %661 = vst [vmem:[%s1353_s1 + $0x298] sm:$0xff] %v660_v43  ;;  %v664_v45 = vld [vmem:[%s1352_s0 + $0x2a8] sm:$0xff]  ;;  %v666_v46 = vld [vmem:[%s1352_s0 + $0x158] sm:$0xff] }
  0x38   :  { %663 = vst [vmem:[%s1353_s1 + $0x148] sm:$0xff] %v662_v44  ;;  %665 = vst [vmem:[%s1353_s1 + $0x308] sm:$0xff] %v664_v45  ;;  %v668_v47 = vld [vmem:[%s1352_s0 + $0x318] sm:$0xff] }
  0x39   :  { %667 = vst [vmem:[%s1353_s1 + $0x1b8] sm:$0xff] %v666_v46  ;;  %669 = vst [vmem:[%s1353_s1 + $0x378] sm:$0xff] %v668_v47 }

</bundles_post_ra>
